<compile_context>
chip_gen: v5e
topology: v5e:2x2
jax: 0.10.0
libtpu: 0.0.40
codegen_flags: <defaults>
</compile_context>

<pallas_src>
import functools

import jax
import jax.numpy as jnp
from jax.experimental import pallas as pl
from jax.experimental.pallas import tpu as pltpu

_LANE = 128
_SUB = 8


def _round_up(x: int, m: int) -> int:
    return ((x + m - 1) // m) * m


def _vmem_tile_bytes(rows: int, cols: int, itemsize: int) -> int:
    """Physical VMEM footprint of an (rows, cols) tile: padded to (8, 128)."""
    return _round_up(max(rows, 1), _SUB) * _round_up(max(cols, 1), _LANE) * itemsize


# ----------------------------------------------------------------------------- kernels
def _rou_kernel(x_ref, w_ref, b_ref, o_ref):
    # Single K pass: MXU matmul (f32 accumulate), f32 bias + tanh epilogue.
    acc = jnp.dot(x_ref[...], w_ref[...], preferred_element_type=jnp.float32)
    o_ref[...] = jnp.tanh(acc + b_ref[...]).astype(o_ref.dtype)


def _rou_kernel_kacc(x_ref, w_ref, b_ref, o_ref, acc_ref):
    # K-gridded variant with a resident f32 accumulator (reduction axis last).
    @pl.when(pl.program_id(2) == 0)
    def _():
        acc_ref[...] = jnp.zeros_like(acc_ref)

    acc_ref[...] += jnp.dot(x_ref[...], w_ref[...], preferred_element_type=jnp.float32)

    @pl.when(pl.program_id(2) == pl.num_programs(2) - 1)
    def _():
        o_ref[...] = jnp.tanh(acc_ref[...] + b_ref[...]).astype(o_ref.dtype)


# ----------------------------------------------------------------------------- wrapper
@functools.partial(jax.jit, static_argnames=("max_tile_b", "use_bf16"))
def rou_forward(x, w, b, *, max_tile_b: int = 2048, use_bf16: bool = False):
    """x: (B, ln), w: (ln, s), b: (s,) -> (B, s) = tanh(x @ w + b)."""
    B, ln = x.shape
    ln_w, s = w.shape
    assert ln == ln_w, "weight in_features mismatch"
    out_dtype = x.dtype

    # ---- Generation-aware VMEM budget (64 MiB v7x, 128 MiB v5e/v6e). ----
    try:
        vmem_cap = int(getattr(pltpu.get_tpu_info(), "vmem_capacity_bytes",
                               64 * 1024 * 1024))
    except Exception:  # pragma: no cover - conservative fallback, legal on any gen
        vmem_cap = 64 * 1024 * 1024
    vmem_limit = max(vmem_cap - 16 * 1024 * 1024, 32 * 1024 * 1024)   # Mosaic headroom
    vmem_budget = (vmem_limit * 3) // 4                               # our own buffers

    in_itemsize = 2 if use_bf16 else x.dtype.itemsize
    out_itemsize = out_dtype.itemsize

    # ---- Output-feature (s) dimension. ----
    if s <= _LANE:
        # Narrow output: block == full dim is legal, avoids 8x write amplification.
        s_out, tile_s = s, s
    else:
        s_out = _round_up(s, _LANE)
        tile_s = s_out

    # ---- Reduction (ln) dimension: start with no K tiling. ----
    tile_k = ln

    def _fits(ts, tk, tb, with_acc):
        w_buf = 2 * _vmem_tile_bytes(tk, ts, in_itemsize)     # double-buffered by pipeline
        b_buf = 2 * _vmem_tile_bytes(1, ts, 4)
        x_buf = 2 * _vmem_tile_bytes(tb, tk, in_itemsize)
        o_buf = 2 * _vmem_tile_bytes(tb, ts, out_itemsize)
        a_buf = _vmem_tile_bytes(tb, ts, 4) if with_acc else 0
        return w_buf + b_buf + x_buf + o_buf + a_buf <= vmem_budget

    # Shrink tile_s (multiples of 128), then tile_k (enables K accumulation),
    # until a minimal (tile_b = 8) configuration fits the VMEM budget.
    while tile_s > _LANE and not _fits(tile_s, tile_k, _SUB, False):
        tile_s = _round_up(tile_s // 2, _LANE)
    while tile_k > _LANE and not _fits(tile_s, tile_k, _SUB, True):
        tile_k = _round_up(tile_k // 2, _LANE)

    if tile_k < ln:
        k_pad = _round_up(ln, tile_k)
        kt = k_pad // tile_k
    else:
        k_pad, kt = ln, 1
    with_acc = kt > 1

    # ---- Batch tile: largest VMEM-legal multiple of 8, capped at max_tile_b. ----
    fixed = 2 * _vmem_tile_bytes(tile_k, tile_s, in_itemsize) + 2 * _vmem_tile_bytes(1, tile_s, 4)
    per_row = (2 * _round_up(tile_k, _LANE) * in_itemsize            # X (double-buffered)
               + 2 * _round_up(tile_s, _LANE) * out_itemsize         # out (double-buffered)
               + (_round_up(tile_s, _LANE) * 4 if with_acc else 0))  # f32 accumulator
    avail = max(vmem_budget - fixed, _SUB * per_row)
    tile_b = max(_SUB, (avail // per_row) // _SUB * _SUB)
    tile_b = min(tile_b, max_tile_b, _round_up(B, _SUB))
    tile_b = max(_SUB, (tile_b // _SUB) * _SUB)

    # Ensure >= 2 batch-grid steps when B allows it (v7x has 2 TCs; no-op cost elsewhere).
    B_pad = _round_up(B, tile_b)
    if B_pad // tile_b == 1 and _round_up(B, _SUB) >= 2 * _SUB:
        tile_b = max(_SUB, _round_up((B + 1) // 2, _SUB))
        B_pad = _round_up(B, tile_b)
    bt = B_pad // tile_b
    st = s_out // tile_s

    # ---- Zero-pad operands (benign: zeros contribute nothing; sliced off at end). ----
    x_p = x
    if B_pad != B or k_pad != ln:
        x_p = jnp.pad(x, ((0, B_pad - B), (0, k_pad - ln)))
    w_p = w
    if k_pad != ln or s_out != s:
        w_p = jnp.pad(w, ((0, k_pad - ln), (0, s_out - s)))
    b_p = b if s_out == s else jnp.pad(b, (0, s_out - s))
    b_p = b_p.reshape(1, s_out)

    if use_bf16:
        # Halves the dominant HBM read stream; accuracy ~1e-2 (gate behind flag).
        x_p = x_p.astype(jnp.bfloat16)
        w_p = w_p.astype(jnp.bfloat16)

    cost = pl.CostEstimate(
        flops=2 * B_pad * k_pad * s_out,
        transcendentals=B_pad * s_out,  # tanh
        bytes_accessed=(in_itemsize * (B_pad * k_pad + k_pad * s_out)
                        + 4 * s_out + out_itemsize * B_pad * s_out),
    )

    if with_acc:
        grid = (bt, st, kt)
        in_specs = [
            pl.BlockSpec((tile_b, tile_k), lambda i, j, k: (i, k)),   # X: batch/K tiled
            pl.BlockSpec((tile_k, tile_s), lambda i, j, k: (k, j)),   # W: K/s tiled
            pl.BlockSpec((1, tile_s), lambda i, j, k: (0, j)),        # b: s tiled
        ]
        out_specs = pl.BlockSpec((tile_b, tile_s), lambda i, j, k: (i, j))
        scratch_shapes = [pltpu.VMEM((tile_b, tile_s), jnp.float32)]
        kernel = _rou_kernel_kacc
        dims = ("parallel", "parallel", "arbitrary")
    else:
        grid = (bt, st)
        in_specs = [
            pl.BlockSpec((tile_b, ln), lambda i, j: (i, 0)),          # X: streamed per batch tile
            pl.BlockSpec((ln, tile_s), lambda i, j: (0, j)),          # W: resident across batch
            pl.BlockSpec((1, tile_s), lambda i, j: (0, j)),           # b: resident across batch
        ]
        out_specs = pl.BlockSpec((tile_b, tile_s), lambda i, j: (i, j))
        scratch_shapes = []
        kernel = _rou_kernel
        dims = ("parallel", "parallel")

    out_padded = pl.pallas_call(
        kernel,
        out_shape=jax.ShapeDtypeStruct((B_pad, s_out), out_dtype),
        grid_spec=pltpu.PrefetchScalarGridSpec(
            num_scalar_prefetch=0,
            grid=grid,
            in_specs=in_specs,
            out_specs=out_specs,
            scratch_shapes=scratch_shapes,
        ),
        compiler_params=pltpu.CompilerParams(
            dimension_semantics=dims,
            vmem_limit_bytes=vmem_limit,
        ),
        cost_estimate=cost,
    )(x_p, w_p, b_p)

    # Undo batch / feature padding.
    if B_pad != B or s_out != s:
        out_padded = out_padded[:B, :s]
    return out_padded


if __name__ == "__main__":
    # Small shapes consistent with the module: ln = in_features, s = out_features.
    # B=10 exercises batch padding; s=16 exercises the narrow-output path.
    B, ln, s = 10, 32, 16

    key = jax.random.PRNGKey(0)
    kx, kw, kb = jax.random.split(key, 3)

    x = jax.random.normal(kx, (B, ln), dtype=jnp.float32)
    # Deterministic parameter init (synthetic, mimics nn.Linear uniform bound).
    bound = 1.0 / jnp.sqrt(jnp.float32(ln))
    w = jax.random.uniform(kw, (ln, s), dtype=jnp.float32, minval=-bound, maxval=bound)
    b = jax.random.uniform(kb, (s,), dtype=jnp.float32, minval=-bound, maxval=bound)

    out = rou_forward(x, w, b)
    out = jax.block_until_ready(out)

    # Reference check in plain JAX (same math as torch: tanh(x @ W^T + b)).
    ref = jnp.tanh(x @ w + b)
    assert out.shape == (B, s), f"bad output shape {out.shape}"
    assert jnp.allclose(out, ref, atol=1e-5, rtol=1e-5), "mismatch vs reference"

    print("KERNEL_OK")
</pallas_src>

<mosaic_0001>
module attributes {stable_mosaic.version = 11 : i64} {
  func.func @_rou_kernel(%arg0: i32, %arg1: i32, %arg2: memref<8x32xf32, #tpu.memory_space<vmem>>, %arg3: memref<32x16xf32, #tpu.memory_space<vmem>>, %arg4: memref<1x16xf32, #tpu.memory_space<vmem>>, %arg5: memref<8x16xf32, #tpu.memory_space<vmem>>) attributes {dimension_semantics = [#tpu.dimension_semantics<parallel>, #tpu.dimension_semantics<parallel>], iteration_bounds = array<i64: 2, 1>, scalar_prefetch = 0 : i64, scratch_operands = 0 : i64, tpu.core_type = #tpu.core_type<tc>, window_params = [{transform_indices = @transform_0, window_bounds = array<i64: 8, 32>}, {transform_indices = @transform_1, window_bounds = array<i64: 32, 16>}, {transform_indices = @transform_2, window_bounds = array<i64: 1, 16>}, {transform_indices = @transform_3, window_bounds = array<i64: 8, 16>}]} {
    %c0 = arith.constant 0 : index
    %c0_0 = arith.constant 0 : index
    %0 = vector.load %arg2[%c0, %c0_0] : memref<8x32xf32, #tpu.memory_space<vmem>>, vector<8x32xf32>
    %c0_1 = arith.constant 0 : index
    %c0_2 = arith.constant 0 : index
    %1 = vector.load %arg3[%c0_1, %c0_2] : memref<32x16xf32, #tpu.memory_space<vmem>>, vector<32x16xf32>
    %cst = arith.constant dense<0.000000e+00> : vector<8x16xf32>
    %2 = tpu.matmul %0, %1, %cst {dimension_numbers = #tpu.dot_dimension_numbers<[1], [0], [0], [1], [0, 0, 1, 1], [], []>} : vector<8x32xf32>, vector<32x16xf32>, vector<8x16xf32> -> vector<8x16xf32>
    %c0_3 = arith.constant 0 : index
    %c0_4 = arith.constant 0 : index
    %3 = vector.load %arg4[%c0_3, %c0_4] : memref<1x16xf32, #tpu.memory_space<vmem>>, vector<1x16xf32>
    %4 = vector.broadcast %3 : vector<1x16xf32> to vector<8x16xf32>
    %5 = arith.addf %2, %4 : vector<8x16xf32>
    %6 = math.tanh %5 : vector<8x16xf32>
    %c0_5 = arith.constant 0 : index
    %c0_6 = arith.constant 0 : index
    %7 = vector.load %arg5[%c0_5, %c0_6] : memref<8x16xf32, #tpu.memory_space<vmem>>, vector<8x16xf32>
    tpu.vector_store %arg5[%c0_5, %c0_6], %6 {strides = array<i32>} : memref<8x16xf32, #tpu.memory_space<vmem>>, vector<8x16xf32>,
    return
  }
  func.func @transform_0(%arg0: i32, %arg1: i32) -> (i32, i32) {
    %c0_i32 = arith.constant 0 : i32
    %c0_i32_0 = arith.constant 0 : i32
    return %arg0, %c0_i32 : i32, i32
  }
  func.func @transform_1(%arg0: i32, %arg1: i32) -> (i32, i32) {
    %c0_i32 = arith.constant 0 : i32
    %c0_i32_0 = arith.constant 0 : i32
    return %c0_i32, %arg1 : i32, i32
  }
  func.func @transform_2(%arg0: i32, %arg1: i32) -> (i32, i32) {
    %c0_i32 = arith.constant 0 : i32
    %c0_i32_0 = arith.constant 0 : i32
    return %c0_i32, %arg1 : i32, i32
  }
  func.func @transform_3(%arg0: i32, %arg1: i32) -> (i32, i32) {
    %c0_i32 = arith.constant 0 : i32
    return %arg0, %arg1 : i32, i32
  }
}

</mosaic_0001>

<bundles_post_ra>
// kernel: rou_forward.1
= control target key start
LH: loop header
LB: loop body
LE: loop exit
PB: predicated region body
PF: predicated region fallthrough
CT: control target
= control target key end

     0   :  { %8 = vsyncpa [#allocation3], 0  ;;  %s643_s0 = inlined_call_operand.vmem [shape: f32[16,32], index: 0, kind: input, shape index: {}]   ;;  %s644_s1 = inlined_call_operand.vmem [shape: f32[32,16], index: 1, kind: input, shape index: {}]   ;;  %s645_s2 = inlined_call_operand.vmem [shape: f32[1,16], index: 2, kind: input, shape index: {}]   ;;  %s646_s3 = inlined_call_operand.hbm [shape: f32[16,16], index: 3, kind: output, shape index: {}]  }
   0x1   :  { %10 = vsyncpa [#allocation3 + $0x1], 0  ;;  %s531_s12 = smov 0   ;;  %s533_s13 = smov 0  }
   0x2   :  { %s535_s14 = smov 0   ;;  %s537_s15 = smov 0  }
   0x3   :  { %s539_s16 = smov 0   ;;  %s541_s17 = smov 0  }
   0x4 LB: > { %s359_s18 = sadd.s32 4294967295, %s509_s17   ;;  %s360_s19 = sadd.s32 4294967294, %s509_s17   ;;  %s509_s17 = sphi %s541_s17, %s16_s17   ;;  %s505_s16 = sphi %s539_s16, %s653_s16   ;;  %s501_s15 = sphi %s537_s15, %s652_s15   ;;  %s497_s14 = sphi %s535_s14, %s651_s14   ;;  %s493_s13 = sphi %s533_s13, %s650_s13   ;;  %s489_s12 = sphi %s531_s12, %s649_s12  }
   0x5   : > { %s28_s20 = sadd.s32 1, %s505_s16  ;;  %s115_s21 = sadd.s32 1, %s497_s14 }
   0x6   : > { %p30_p0 = scmp.ge.s32.totalorder %s28_s20, 2  ;;  %p125_p1 = scmp.ne.s32.totalorder %s497_s14, %s493_s13 }
   0x7   : > { %p126_p2 = scmp.eq.s32.totalorder %s359_s18, 1  ;;  %p131_p3 = scmp.ne.s32.totalorder %s493_s13, %s489_s12 }
   0x8   : > { %s655_s20 = smov (%p30_p0, %s28_s20), 0  ;;  %p132_p5 = scmp.eq.s32.totalorder %s360_s19, 1 }
   0x9   : > { %p571_p4 = por %p126_p2, %p125_p1  ;;  %s110_s23 = ssub.s32 %s505_s16, %s655_s20 }
   0xa   : > { %p365_p6 = scmp.ge.s32.totalorder %s509_s17, 1  ;;  %p113_p7 = scmp.eq.s32.totalorder %s110_s23, 0 }
   0xb   : > { %p578_p8 = por %p132_p5, %p131_p3  ;;  %p170_p9 = scmp.lt.s32.totalorder %s509_s17, 3 }
   0xc   : > { %s584_s25 = scalar_select %p113_p7, %s497_s14, %s115_s21  }
   0xd   : > { %p171_p10 = pnand %p365_p6, %p170_p9 }
   0xe   : > { %p200_p11 = scmp.lt.s32.totalorder (!%p171_p10), %s501_s15, 1  ;;  %s197_s18 = sand.u32 (!%p171_p10), 1, %s493_s13  }
   0xf   : > { %174 = sbr.rel (%p171_p10) target bundleno = 166 (0xa6), region = 32  ;;  %s366_s23 = sshll.u32 (!%p171_p10), %s197_s18, 3 }
  0x10   : > { %s370_s26 = sshll.u32 (!%p171_p10), %s501_s15, 3  ;;  %s199_s30 = scalar_lea.vmem (!%p171_p10), [#allocation2], %s366_s23 }
  0x11   : > { %s259_s29 = scalar_lea.hbm (!%p171_p10), %s646_s3, %s370_s26  ;;  %s261_s4 = sshll.u32 (!%p171_p10), %s199_s30, 4  ;;  %s262_s4 = int_to_ptr.vmem [resolvable:$true] %s261_s4 }
  0x12   : > { %s248_s6 = scalar_lea.sflag (!%p171_p10), [#allocation3], %s197_s18  ;;  %s451_s10 = scalar_lea.hbm (!%p171_p10), %s646_s3, 16 }
  0x14   : > { %v215_v0 = vld [vmem:[%s644_s1 + $0x18] sm:$0xff]  ;;  %v214_v1 = vld [vmem:[%s644_s1 + $0x10] sm:$0xff]  ;;  %v213_v2 = vld [vmem:[%s644_s1 + $0x8] sm:$0xff]  ;;  %s201_s5 = scalar_select %p200_p11, %s501_s15, 1  ;;  %vm220_vm0 = vcmask 261120   ;;  %vm245_vm1 = vcmask 130048  }
  0x15   : > { %236 = vmatpush.msra.mxu0 %v215_v0  ;;  %v212_v3 = vld [vmem:[%s644_s1] sm:$0xff] }
  0x16   : > { %s367_s8 = sshll.u32 %s201_s5, 3  ;;  %v428_v5 = vld [vmem:[%s645_s2] ss:$0 sm:$0xff]  ;;  %s263_s5 = sshll.u32 %s259_s29, 4  ;;  %s264_s5 = int_to_ptr.hbm [resolvable:$true] %s263_s5 }
  0x17   : > { %237 = vmatpush.msra.mxu0 %v214_v1  ;;  %s203_s11 = scalar_lea.vmem %s643_s0, %s367_s8  ;;  %s445_s7 = sshra.s32 %s264_s5, 4  ;;  %s446_s7 = int_to_ptr.hbm [resolvable:$true] %s445_s7 }
  0x18   : > { %v211_v4 = vld [vmem:[%s203_s11] sm:$0xff]  ;;  %s447_s15 = scalar_lea.hbm %s446_s7, 8  ;;  %p452_p1 = scmp.lt.s32.totalorder %s446_s7, %s646_s3 }
  0x19   : > { %238 = vmatpush.msra.mxu0 %v213_v2  ;;  %p448_p12 = scmp.ne.s32.totalorder %s446_s7, %s447_s15  ;;  %p453_p2 = scmp.lt.s32.totalorder %s451_s10, %s447_s15 }
  0x1b   : > { %239 = vmatpush.msra.mxu0 %v212_v3  ;;  %p449_p13 = pnand %p448_p12, %p571_p4  ;;  %p454_p3 = por %p453_p2, %p452_p1 }
  0x1c   : > { %368 = vmatmul.msk.f32.vlgmr.msra.gmra.mxu0 %vm220_vm0, %v211_v4 }
  0x1d   : > { %p450_p0 = pneg %p449_p13 }
  0x1f   : > { %p455_p5 = pnand %p454_p3, %p450_p0 }
  0x99   : > { %v241_v6 = vpop.f32.mrf.mxu0 }
  0x9a   : > { %v242_v7 = vadd.f32 %v428_v5, %v241_v6 }
  0x9c   : > { %429 = vtanh.f32 %v242_v7 }
  0xa2   : > { %v430_v8 = vpop.eup %429 }
  0xa3   : > { %246 = vst.msk [vmem:[%s199_s30] sm:$0xff] %vm245_vm1, %v430_v8 }
  0xa4   : > { %458 = shalt.err (!%p455_p5)
}
  0xa5   : > { %373 = dma.vmem_to_hbm [thread:$0]  (%p571_p4), %s262_s4, 128, %s264_s5, %s248_s6  }
  0xa6 PF: > { %p379_p6 = scmp.ge.s32.totalorder %s509_s17, 2  ;;  %s275_s18 = sand.u32 1, %s489_s12  }
  0xa7   : > { %s276_s21 = scalar_lea.sflag [#allocation3], %s275_s18 }
  0xa8   : > { %p376_p7 = pnand %p379_p6, %p578_p8 }
  0xaa   : > { %p377_p9 = pneg %p376_p7 }
  0xac   : > { %484 = dma.done.wait (%p377_p9), %s276_s21, 128  }
  0xad   : > { %486 = vsyncadd (%p377_p9), %s276_s21, 4294967168  ;;  %s16_s17 = sadd.s32 1, %s509_s17   ;;  %s649_s12 = smov %s493_s13 }
  0xae   : > { %p13_p10 = scmp.ge.s32.totalorder %s16_s17, 4   ;;  %s650_s13 = smov %s497_s14 }
  0xaf   : > { %s651_s14 = smov %s584_s25  ;;  %s652_s15 = smov %s505_s16 }
  0xb0   : > { %s653_s16 = smov %s655_s20  ;;  %15 = sbr.rel (!%p13_p10) target bundleno = 4 (0x4), region = 73 }
  0xb5   :  { %282 = vsyncpa [#allocation3], 1 }
  0xb6   :  { %284 = vsyncpa [#allocation3 + $0x1], 1 }

</bundles_post_ra>
